<compile_context>
chip_gen: v7x
topology: tpu7x:2x2x1
jax: 0.10.0
libtpu: 0.0.40
codegen_flags: <defaults>
</compile_context>

<pallas_src>
import functools
import math

import jax
import jax.numpy as jnp
from jax.experimental import pallas as pl
from jax.experimental.pallas import tpu as pltpu


def _round_up(a: int, b: int) -> int:
    return -(-a // b) * b


def low_rank_adapter_kernel(x_ref, wl_d_ref, wr_d_ref, b_d_ref,
                            wl_u_ref, wr_u_ref, b_u_ref, o_ref):
    # Wl matrices are passed transposed: (rank, in_features).
    rank = wl_d_ref.shape[0]
    x = x_ref[...]                      # (tile_n, d_pad), native dtype

    # ---- down_sampler: (x @ Wl_down) @ Wr_down + b_down, factorized by rank ----
    if rank == 1:
        # rank-1: broadcast multiply (VPU) + lane reduce (XLU); no MXU, no
        # composed (d, down) weight in vregs.
        t = jnp.sum((x * wl_d_ref[...]).astype(jnp.float32),
                    axis=-1, keepdims=True)                      # (tile_n, 1)
        z = t * wr_d_ref[...] + b_d_ref[...]                     # (tile_n, down)
    else:
        t = jax.lax.dot_general(
            x, wl_d_ref[...],
            dimension_numbers=(((1,), (1,)), ((), ())),
            preferred_element_type=jnp.float32)                  # (tile_n, rank)
        z = jnp.dot(t, wr_d_ref[...],
                    preferred_element_type=jnp.float32) + b_d_ref[...]

    # activation (config.non_linearity = "relu"), in f32 on the accumulator.
    z = jnp.maximum(z, 0.0)

    # ---- up_sampler: (z @ Wl_up) @ Wr_up + b_up, factorized by rank ----
    if rank == 1:
        s = jnp.sum((z * wl_u_ref[...]).astype(jnp.float32),
                    axis=-1, keepdims=True)                      # (tile_n, 1)
        out = s * wr_u_ref[...] + b_u_ref[...]                   # (tile_n, d_pad)
    else:
        s = jax.lax.dot_general(
            z, wl_u_ref[...],
            dimension_numbers=(((1,), (1,)), ((), ())),
            preferred_element_type=jnp.float32)
        out = jnp.dot(s, wr_u_ref[...],
                      preferred_element_type=jnp.float32) + b_u_ref[...]

    o_ref[...] = out.astype(o_ref.dtype)


@functools.partial(jax.jit, static_argnames=("tile_n",))
def low_rank_adapter(x, wl_d, wr_d, b_d, wl_u, wr_u, b_u, *, tile_n=None):
    batch, seq, d = x.shape
    n = batch * seq
    rank = wl_d.shape[1]
    down = wr_d.shape[1]

    # --- tiling: real row tiles so BlockSpec pipelining works; pad N + lanes ---
    if tile_n is None:
        tile_n = min(512, _round_up(n, 8))
    tile_n = _round_up(int(tile_n), 8)
    n_pad = _round_up(n, tile_n)
    d_pad = _round_up(d, 128)            # lane-dense output slab

    x2 = x.reshape(n, d)
    if n_pad > n or d_pad > d:
        x2 = jnp.pad(x2, ((0, n_pad - n), (0, d_pad - d)))

    # --- weight prep hoisted out of the kernel (tiny arrays, done once) ---
    wl_d_t = wl_d.T.astype(x.dtype)                  # (rank, d) in x's dtype
    wr_d_p = wr_d.astype(jnp.float32)                # (rank, down)
    b_d_p = b_d.reshape(1, down).astype(jnp.float32)
    wl_u_t = wl_u.T.astype(jnp.float32)              # (rank, down)
    wr_u_p = wr_u.astype(jnp.float32)                # (rank, d)
    b_u_p = b_u.reshape(1, d).astype(jnp.float32)
    if d_pad > d:
        wl_d_t = jnp.pad(wl_d_t, ((0, 0), (0, d_pad - d)))
        wr_u_p = jnp.pad(wr_u_p, ((0, 0), (0, d_pad - d)))
        b_u_p = jnp.pad(b_u_p, ((0, 0), (0, d_pad - d)))

    grid = (n_pad // tile_n,)

    out2 = pl.pallas_call(
        low_rank_adapter_kernel,
        out_shape=jax.ShapeDtypeStruct((n_pad, d_pad), x.dtype),
        grid_spec=pl.GridSpec(
            grid=grid,
            in_specs=[
                pl.BlockSpec((tile_n, d_pad), lambda i: (i, 0)),   # x rows tile
                pl.BlockSpec((rank, d_pad), lambda i: (0, 0)),     # down Wl^T
                pl.BlockSpec((rank, down), lambda i: (0, 0)),      # down Wr
                pl.BlockSpec((1, down), lambda i: (0, 0)),         # down bias
                pl.BlockSpec((rank, down), lambda i: (0, 0)),      # up Wl^T
                pl.BlockSpec((rank, d_pad), lambda i: (0, 0)),     # up Wr
                pl.BlockSpec((1, d_pad), lambda i: (0, 0)),        # up bias
            ],
            out_specs=pl.BlockSpec((tile_n, d_pad), lambda i: (i, 0)),
        ),
        compiler_params=pltpu.CompilerParams(
            dimension_semantics=("parallel",),
            vmem_limit_bytes=32 * 1024 * 1024),
    )(x2, wl_d_t, wr_d_p, b_d_p, wl_u_t, wr_u_p, b_u_p)

    return out2[:n, :d].reshape(batch, seq, d)


def _glorot_uniform(key, shape, dtype=jnp.float32):
    fan_in, fan_out = shape[0], shape[1]
    limit = math.sqrt(6.0 / (fan_in + fan_out))
    return jax.random.uniform(key, shape, dtype, minval=-limit, maxval=limit)


def _reference(x, wl_d, wr_d, b_d, wl_u, wr_u, b_u):
    # Pure-JAX reference mirroring the PyTorch forward exactly.
    z = x @ (wl_d @ wr_d) + b_d
    z = jnp.maximum(z, 0.0)
    return z @ (wl_u @ wr_u) + b_u


if __name__ == "__main__":
    # Config (synthetic, deterministic): input_dim=32, reduction_factor=4,
    # low_rank_rank=1, non_linearity="relu".
    batch, seq = 2, 8
    input_dim = 32
    reduction_factor = 4
    rank = 1
    down = input_dim // reduction_factor  # = 8

    key = jax.random.PRNGKey(0)
    kx, k1, k2, k3, k4 = jax.random.split(key, 5)

    x = jax.random.normal(kx, (batch, seq, input_dim), jnp.float32)

    # LowRankLinear params: glorot-uniform weights, zero biases.
    wl_d = _glorot_uniform(k1, (input_dim, rank))
    wr_d = _glorot_uniform(k2, (rank, down))
    b_d = jnp.zeros((down,), jnp.float32)
    wl_u = _glorot_uniform(k3, (down, rank))
    wr_u = _glorot_uniform(k4, (rank, input_dim))
    b_u = jnp.zeros((input_dim,), jnp.float32)

    # tile_n=8 gives a 2-step grid even at these tiny demo shapes, so the
    # pipelined path is exercised; real shapes use the 512-row default.
    out = low_rank_adapter(x, wl_d, wr_d, b_d, wl_u, wr_u, b_u, tile_n=8)
    out = jax.block_until_ready(out)

    ref = _reference(x, wl_d, wr_d, b_d, wl_u, wr_u, b_u)
    assert out.shape == (batch, seq, input_dim)
    assert jnp.allclose(out, ref, atol=1e-5, rtol=1e-5), "mismatch vs reference"

    print("KERNEL_OK")
</pallas_src>

<mosaic_0001>
module attributes {stable_mosaic.version = 11 : i64} {
  func.func @low_rank_adapter_kernel(%arg0: i32, %arg1: memref<8x128xf32, #tpu.memory_space<vmem>>, %arg2: memref<1x128xf32, #tpu.memory_space<vmem>>, %arg3: memref<1x8xf32, #tpu.memory_space<vmem>>, %arg4: memref<1x8xf32, #tpu.memory_space<vmem>>, %arg5: memref<1x8xf32, #tpu.memory_space<vmem>>, %arg6: memref<1x128xf32, #tpu.memory_space<vmem>>, %arg7: memref<1x128xf32, #tpu.memory_space<vmem>>, %arg8: memref<8x128xf32, #tpu.memory_space<vmem>>) attributes {dimension_semantics = [#tpu.dimension_semantics<parallel>], iteration_bounds = array<i64: 2>, scalar_prefetch = 0 : i64, scratch_operands = 0 : i64, tpu.core_type = #tpu.core_type<tc>, window_params = [{transform_indices = @transform_0, window_bounds = array<i64: 8, 128>}, {pipeline_mode = #tpu.pipeline_mode<synchronous>, transform_indices = @transform_1, window_bounds = array<i64: 1, 128>}, {pipeline_mode = #tpu.pipeline_mode<synchronous>, transform_indices = @transform_2, window_bounds = array<i64: 1, 8>}, {pipeline_mode = #tpu.pipeline_mode<synchronous>, transform_indices = @transform_3, window_bounds = array<i64: 1, 8>}, {pipeline_mode = #tpu.pipeline_mode<synchronous>, transform_indices = @transform_4, window_bounds = array<i64: 1, 8>}, {pipeline_mode = #tpu.pipeline_mode<synchronous>, transform_indices = @transform_5, window_bounds = array<i64: 1, 128>}, {pipeline_mode = #tpu.pipeline_mode<synchronous>, transform_indices = @transform_6, window_bounds = array<i64: 1, 128>}, {transform_indices = @transform_7, window_bounds = array<i64: 8, 128>}]} {
    %c0 = arith.constant 0 : index
    %c0_0 = arith.constant 0 : index
    %0 = vector.load %arg1[%c0, %c0_0] : memref<8x128xf32, #tpu.memory_space<vmem>>, vector<8x128xf32>
    %c0_1 = arith.constant 0 : index
    %c0_2 = arith.constant 0 : index
    %1 = vector.load %arg2[%c0_1, %c0_2] : memref<1x128xf32, #tpu.memory_space<vmem>>, vector<1x128xf32>
    %2 = vector.broadcast %1 : vector<1x128xf32> to vector<8x128xf32>
    %3 = arith.mulf %0, %2 : vector<8x128xf32>
    %cst = arith.constant dense<0.000000e+00> : vector<8xf32>
    %4 = vector.multi_reduction <add>, %3, %cst [1] : vector<8x128xf32> to vector<8xf32>
    %5 = vector.shape_cast %4 : vector<8xf32> to vector<8x1xf32>
    %c0_3 = arith.constant 0 : index
    %c0_4 = arith.constant 0 : index
    %6 = vector.load %arg3[%c0_3, %c0_4] : memref<1x8xf32, #tpu.memory_space<vmem>>, vector<1x8xf32>
    %7 = vector.broadcast %5 : vector<8x1xf32> to vector<8x8xf32>
    %8 = vector.broadcast %6 : vector<1x8xf32> to vector<8x8xf32>
    %9 = arith.mulf %7, %8 : vector<8x8xf32>
    %c0_5 = arith.constant 0 : index
    %c0_6 = arith.constant 0 : index
    %10 = vector.load %arg4[%c0_5, %c0_6] : memref<1x8xf32, #tpu.memory_space<vmem>>, vector<1x8xf32>
    %11 = vector.broadcast %10 : vector<1x8xf32> to vector<8x8xf32>
    %12 = arith.addf %9, %11 : vector<8x8xf32>
    %cst_7 = arith.constant 0.000000e+00 : f32
    %13 = vector.broadcast %cst_7 : f32 to vector<8x8xf32>
    %14 = arith.maximumf %12, %13 : vector<8x8xf32>
    %c0_8 = arith.constant 0 : index
    %c0_9 = arith.constant 0 : index
    %15 = vector.load %arg5[%c0_8, %c0_9] : memref<1x8xf32, #tpu.memory_space<vmem>>, vector<1x8xf32>
    %16 = vector.broadcast %15 : vector<1x8xf32> to vector<8x8xf32>
    %17 = arith.mulf %14, %16 : vector<8x8xf32>
    %cst_10 = arith.constant dense<0.000000e+00> : vector<8xf32>
    %18 = vector.multi_reduction <add>, %17, %cst_10 [1] : vector<8x8xf32> to vector<8xf32>
    %19 = vector.shape_cast %18 : vector<8xf32> to vector<8x1xf32>
    %c0_11 = arith.constant 0 : index
    %c0_12 = arith.constant 0 : index
    %20 = vector.load %arg6[%c0_11, %c0_12] : memref<1x128xf32, #tpu.memory_space<vmem>>, vector<1x128xf32>
    %21 = vector.broadcast %19 : vector<8x1xf32> to vector<8x128xf32>
    %22 = vector.broadcast %20 : vector<1x128xf32> to vector<8x128xf32>
    %23 = arith.mulf %21, %22 : vector<8x128xf32>
    %c0_13 = arith.constant 0 : index
    %c0_14 = arith.constant 0 : index
    %24 = vector.load %arg7[%c0_13, %c0_14] : memref<1x128xf32, #tpu.memory_space<vmem>>, vector<1x128xf32>
    %25 = vector.broadcast %24 : vector<1x128xf32> to vector<8x128xf32>
    %26 = arith.addf %23, %25 : vector<8x128xf32>
    %c0_15 = arith.constant 0 : index
    %c0_16 = arith.constant 0 : index
    %27 = vector.load %arg8[%c0_15, %c0_16] : memref<8x128xf32, #tpu.memory_space<vmem>>, vector<8x128xf32>
    tpu.vector_store %arg8[%c0_15, %c0_16], %26 {strides = array<i32>} : memref<8x128xf32, #tpu.memory_space<vmem>>, vector<8x128xf32>,
    return
  }
  func.func @transform_0(%arg0: i32) -> (i32, i32) {
    %c0_i32 = arith.constant 0 : i32
    %c0_i32_0 = arith.constant 0 : i32
    return %arg0, %c0_i32 : i32, i32
  }
  func.func @transform_1(%arg0: i32) -> (i32, i32) {
    %c0_i32 = arith.constant 0 : i32
    %c0_i32_0 = arith.constant 0 : i32
    %c0_i32_1 = arith.constant 0 : i32
    return %c0_i32, %c0_i32_0 : i32, i32
  }
  func.func @transform_2(%arg0: i32) -> (i32, i32) {
    %c0_i32 = arith.constant 0 : i32
    %c0_i32_0 = arith.constant 0 : i32
    %c0_i32_1 = arith.constant 0 : i32
    return %c0_i32, %c0_i32_0 : i32, i32
  }
  func.func @transform_3(%arg0: i32) -> (i32, i32) {
    %c0_i32 = arith.constant 0 : i32
    %c0_i32_0 = arith.constant 0 : i32
    %c0_i32_1 = arith.constant 0 : i32
    return %c0_i32, %c0_i32_0 : i32, i32
  }
  func.func @transform_4(%arg0: i32) -> (i32, i32) {
    %c0_i32 = arith.constant 0 : i32
    %c0_i32_0 = arith.constant 0 : i32
    %c0_i32_1 = arith.constant 0 : i32
    return %c0_i32, %c0_i32_0 : i32, i32
  }
  func.func @transform_5(%arg0: i32) -> (i32, i32) {
    %c0_i32 = arith.constant 0 : i32
    %c0_i32_0 = arith.constant 0 : i32
    %c0_i32_1 = arith.constant 0 : i32
    return %c0_i32, %c0_i32_0 : i32, i32
  }
  func.func @transform_6(%arg0: i32) -> (i32, i32) {
    %c0_i32 = arith.constant 0 : i32
    %c0_i32_0 = arith.constant 0 : i32
    %c0_i32_1 = arith.constant 0 : i32
    return %c0_i32, %c0_i32_0 : i32, i32
  }
  func.func @transform_7(%arg0: i32) -> (i32, i32) {
    %c0_i32 = arith.constant 0 : i32
    %c0_i32_0 = arith.constant 0 : i32
    return %arg0, %c0_i32 : i32, i32
  }
}

</mosaic_0001>

<bundles_post_ra>
// kernel: low_rank_adapter.1
= control target key start
LH: loop header
LB: loop body
LE: loop exit
PB: predicated region body
PF: predicated region fallthrough
CT: control target
= control target key end

     0   :  { %s455_s24 = smov 0   ;;  %s490_s0 = inlined_call_operand.vmem [shape: f32[16,128], index: 0, kind: input, shape index: {}]   ;;  %s491_s1 = inlined_call_operand.vmem [shape: f32[1,128], index: 1, kind: input, shape index: {}]   ;;  %s492_s2 = inlined_call_operand.vmem [shape: f32[1,8], index: 2, kind: input, shape index: {}]   ;;  %s493_s3 = inlined_call_operand.vmem [shape: f32[1,8], index: 3, kind: input, shape index: {}]   ;;  %s494_s4 = inlined_call_operand.vmem [shape: f32[1,8], index: 4, kind: input, shape index: {}]   ;;  %s495_s5 = inlined_call_operand.vmem [shape: f32[1,128], index: 5, kind: input, shape index: {}]   ;;  %s496_s6 = inlined_call_operand.vmem [shape: f32[1,128], index: 6, kind: input, shape index: {}]   ;;  %s497_s7 = inlined_call_operand.vmem [shape: f32[16,128], index: 7, kind: output, shape index: {}]  }
   0x1 LB: > { %s384_s25 = sadd.s32 4294967295, %s413_s24   ;;  %p388_p0 = scmp.ge.s32.totalorder %s413_s24, 1  ;;  %s413_s24 = sphi %s455_s24, %s17_s24  }
   0x2   : > { %p236_p1 = scmp.lt.s32.totalorder %s413_s24, 3 }
   0x4   : > { %p237_p2 = pnand %p388_p0, %p236_p1 }
   0x5   : > { %p266_p3 = scmp.lt.s32.totalorder (!%p237_p2), %s384_s25, 1  ;;  %v391_v0 = vld [vmem:[%s491_s1] ss:$0 sm:$0xff] (!%p237_p2)  ;;  %vm310_vm0 = vcmask (!%p237_p2), 64512  }
   0x6   : > { %240 = sbr.rel (%p237_p2) target bundleno = 317 (0x13d), region = 48  ;;  %v392_v3 = vld [vmem:[%s492_s2] ss:$0 sm:$0xff] (!%p237_p2) }
   0x7   : > { %v393_v4 = vld [vmem:[%s493_s3] ss:$0 sm:$0xff] (!%p237_p2) }
   0x8   : > { %v394_v8 = vld [vmem:[%s494_s4] ss:$0 sm:$0xff] (!%p237_p2) }
   0x9   : > { %v395_v12 = vld [vmem:[%s495_s5] ss:$0 sm:$0xff] (!%p237_p2) }
   0xa   : > { %v396_v13 = vld [vmem:[%s496_s6] ss:$0 sm:$0xff] (!%p237_p2) }
   0xd   : > { %s499_s25 = smov (!%p266_p3, %s384_s25), 1 }
   0xe   : > { %s389_s26 = sshll.u32 %s499_s25, 3 }
   0xf   : > { %s269_s8 = scalar_lea.vmem %s490_s0, %s389_s26  ;;  %s273_s21 = scalar_lea.vmem %s497_s7, %s389_s26 }
  0x10   : > { %v274_v1 = vld [vmem:[%s269_s8] sm:$0xff] }
  0x11   : > { %v282_v2 = vmul.f32 %v391_v0, %v274_v1 }
  0x13   : > { %283 = vadd.xlane.f32.xlu0 %v282_v2 }
  0xa0   : > { %v284_v5 = vpop.xlane.xlu0 %283 }
  0xa1   : > { %v292_v6 = vmul.f32 %v392_v3, %v284_v5 }
  0xa3   : > { %v300_v7 = vadd.f32 %v393_v4, %v292_v6 }
  0xa5   : > { %v301_v9 = vmax.f32 %v300_v7, 0.0 }
  0xa7   : > { %v309_v10 = vmul.f32 %v394_v8, %v301_v9 }
  0xa9   : > { %v311_v11 = vsel %vm310_vm0, %v309_v10, 0.0 }
  0xaa   : > { %312 = vadd.xlane.f32.xlu0 %v311_v11 }
 0x137   : > { %v313_v14 = vpop.xlane.xlu0 %312 }
 0x138   : > { %v321_v15 = vmul.f32 %v395_v12, %v313_v14 }
 0x13a   : > { %v329_v16 = vadd.f32 %v396_v13, %v321_v15 }
 0x13c   : > { %330 = vst [vmem:[%s273_s21] sm:$0xff] %v329_v16 }
 0x13d PF: > { %s17_s24 = sadd.s32 1, %s413_s24  }
 0x13e   : > { %p14_p4 = scmp.ge.s32.totalorder %s17_s24, 4  }
 0x140   :  { %16 = sbr.rel (!%p14_p4) target bundleno = 1 (0x1), region = 78 }

</bundles_post_ra>
